<compile_context>
chip_gen: v5e
topology: v5e:2x2
jax: 0.10.0
libtpu: 0.0.40
codegen_flags: <defaults>
</compile_context>

<pallas_src>
import functools

import jax
import jax.numpy as jnp
from jax import lax
from jax.experimental import pallas as pl
from jax.experimental.pallas import tpu as pltpu

_INV_SQRT2 = 0.7071067811865476


def _shuffle_gate_kernel(x_ref, w_ref, p_ref, o_ref, *, precision):
    """x_ref/o_ref: (C, tm) NCHW-native tile (channels on sublanes, spatial on lanes).

    w_ref: (C, C) grouped-1x1-conv weight with the channel shuffle folded into
           its columns (block-diagonal up to a column permutation).
    p_ref: (C, C) permutation matrix producing x_s = P @ x for the gate.
    """
    x = x_ref[...]                                                    # (C, tm), input dtype
    # grouped 1x1 conv on the shuffled activations == one dense MXU matmul
    y = jnp.dot(w_ref[...], x, preferred_element_type=jnp.float32,
                precision=precision)                                  # (C, tm) f32
    # x_s for the gate: permutation matmul on the MXU (exact for bf16 inputs,
    # ~f32-exact under HIGHEST for f32 inputs).
    x_s = jnp.dot(p_ref[...], x, preferred_element_type=jnp.float32,
                  precision=precision)                                # (C, tm) f32
    # exact (erf-based) GELU, matching F.gelu default.
    g = 0.5 * y * (1.0 + lax.erf(y * _INV_SQRT2))
    o_ref[...] = (g * x_s).astype(o_ref.dtype)


def shuffle_gate(x, weight, groups=8, block_m=2048):
    """x: (N, C, H, W); weight: (C_out, C_in//groups, 1, 1) (PyTorch layout)."""
    N, C, H, W = x.shape
    out_c = weight.shape[0]
    assert C % groups == 0, "in_channels must be divisible by groups"
    assert out_c % groups == 0, "out_channels must be divisible by groups"
    assert out_c == C, "gelu(gconv(x_s)) * x_s requires out_channels == in_channels"
    cpg = C // groups            # input channels per group
    opg = out_c // groups        # output channels per group

    # bf16 end-to-end when the model runs bf16; f32 + HIGHEST precision otherwise.
    wdt = jnp.bfloat16 if x.dtype == jnp.bfloat16 else jnp.float32
    precision = (lax.Precision.DEFAULT if wdt == jnp.bfloat16
                 else lax.Precision.HIGHEST)

    # --- trace-time weight prep (no activation HBM traffic) ---------------
    # block-diagonal (C_out, C_in) matrix of the grouped 1x1 conv acting on x_s
    w2 = weight.reshape(out_c, cpg).astype(jnp.float32)               # (C_out, cpg)
    w_bd = jnp.zeros((out_c, C), jnp.float32)
    for g in range(groups):      # trace-time loop, groups is small
        w_bd = lax.dynamic_update_slice(w_bd, w2[g * opg:(g + 1) * opg],
                                        (g * opg, g * cpg))
    # channel shuffle permutation: x_s[c'] = x[perm[c']]
    c_idx = jnp.arange(C)
    perm = (c_idx % groups) * cpg + c_idx // groups
    inv_perm = jnp.argsort(perm)
    # fold the shuffle into the conv weight so the matmul consumes un-shuffled x:
    #   y = w_bd @ x_s = w_bd @ (P @ x) = (w_bd[:, inv_perm]) @ x
    w_fold = w_bd[:, inv_perm].astype(wdt)                            # (C_out, C)
    # permutation matrix that reproduces x_s inside the kernel (for the gate)
    p_mat = jnp.eye(C, dtype=wdt)[perm]                               # (C, C)

    # --- NCHW-native tiling: (N, C, H*W), spatial on the 128-lane axis ----
    HW = H * W
    x3 = x.reshape(N, C, HW)                                          # free reshape
    if HW <= block_m:
        tm = HW                                   # full spatial extent (always legal)
    else:
        tm = max(128, (block_m // 128) * 128)     # lane-aligned tile, unmasked vst
    gm = pl.cdiv(HW, tm)                          # ragged edge handled by Pallas

    kernel = functools.partial(_shuffle_gate_kernel, precision=precision)

    out3 = pl.pallas_call(
        kernel,
        out_shape=jax.ShapeDtypeStruct((N, out_c, HW), x.dtype),
        grid_spec=pltpu.PrefetchScalarGridSpec(
            num_scalar_prefetch=0,
            grid=(N, gm),
            in_specs=[
                pl.BlockSpec((None, C, tm), lambda n, m: (n, 0, m)),      # activations
                pl.BlockSpec((out_c, C), lambda n, m: (0, 0)),            # folded weight
                pl.BlockSpec((C, C), lambda n, m: (0, 0)),                # permutation
            ],
            out_specs=pl.BlockSpec((None, out_c, tm), lambda n, m: (n, 0, m)),
        ),
        compiler_params=pltpu.CompilerParams(
            dimension_semantics=("parallel", "parallel")),                # megacore-friendly
    )(x3, w_fold, p_mat)

    return out3.reshape(N, out_c, H, W)                                   # free reshape


def _reference(x, weight, groups):
    """Pure-JAX reference of the PyTorch forward (for verification)."""
    N, C, H, W = x.shape
    cpg = C // groups
    xs = (x.reshape(N, groups, cpg, H, W)
            .transpose(0, 2, 1, 3, 4)
            .reshape(N, C, H, W))
    dn = lax.conv_dimension_numbers(xs.shape, weight.shape, ("NCHW", "OIHW", "NCHW"))
    y = lax.conv_general_dilated(
        xs, weight, window_strides=(1, 1), padding="VALID",
        dimension_numbers=dn, feature_group_count=groups,
        precision=lax.Precision.HIGHEST)
    return jax.nn.gelu(y, approximate=False) * xs


if __name__ == "__main__":
    key = jax.random.PRNGKey(0)
    kx, kw = jax.random.split(key)

    # small shapes consistent with the module (groups=8 requires C % 8 == 0)
    N, C, H, W = 2, 32, 16, 16
    groups = 8
    x = jax.random.normal(kx, (N, C, H, W), dtype=jnp.float32)
    # nn.Conv2d(C, C, 1, groups=groups, bias=False) weight layout: (out, in//g, 1, 1)
    weight = 0.1 * jax.random.normal(kw, (C, C // groups, 1, 1), dtype=jnp.float32)

    out = jax.block_until_ready(shuffle_gate(x, weight, groups=groups))
    ref = jax.block_until_ready(_reference(x, weight, groups))

    assert out.shape == (N, C, H, W)
    max_err = float(jnp.max(jnp.abs(out - ref)))
    assert max_err < 1e-4, f"mismatch vs reference: {max_err}"

    print("KERNEL_OK")
</pallas_src>

<mosaic_0001>
module attributes {stable_mosaic.version = 11 : i64} {
  func.func @_shuffle_gate_kernel(%arg0: i32, %arg1: i32, %arg2: memref<1x32x256xf32, #tpu.memory_space<vmem>>, %arg3: memref<32x32xf32, #tpu.memory_space<vmem>>, %arg4: memref<32x32xf32, #tpu.memory_space<vmem>>, %arg5: memref<1x32x256xf32, #tpu.memory_space<vmem>>) attributes {dimension_semantics = [#tpu.dimension_semantics<parallel>, #tpu.dimension_semantics<parallel>], iteration_bounds = array<i64: 2, 1>, scalar_prefetch = 0 : i64, scratch_operands = 0 : i64, tpu.core_type = #tpu.core_type<tc>, window_params = [{transform_indices = @transform_0, window_bounds = array<i64: 1, 32, 256>}, {pipeline_mode = #tpu.pipeline_mode<synchronous>, transform_indices = @transform_1, window_bounds = array<i64: 32, 32>}, {pipeline_mode = #tpu.pipeline_mode<synchronous>, transform_indices = @transform_2, window_bounds = array<i64: 32, 32>}, {transform_indices = @transform_3, window_bounds = array<i64: 1, 32, 256>}]} {
    %c0 = arith.constant 0 : index
    %c0_0 = arith.constant 0 : index
    %c0_1 = arith.constant 0 : index
    %0 = vector.load %arg2[%c0, %c0_0, %c0_1] : memref<1x32x256xf32, #tpu.memory_space<vmem>>, vector<1x32x256xf32>
    %1 = vector.shape_cast %0 : vector<1x32x256xf32> to vector<32x256xf32>
    %c0_2 = arith.constant 0 : index
    %c0_3 = arith.constant 0 : index
    %2 = vector.load %arg3[%c0_2, %c0_3] : memref<32x32xf32, #tpu.memory_space<vmem>>, vector<32x32xf32>
    %cst = arith.constant dense<0.000000e+00> : vector<32x256xf32>
    %3 = tpu.matmul %2, %1, %cst {dimension_numbers = #tpu.dot_dimension_numbers<[1], [0], [0], [1], [0, 0, 1, 1], [], []>, precision = #tpu.contract_precision<fp32>} : vector<32x32xf32>, vector<32x256xf32>, vector<32x256xf32> -> vector<32x256xf32>
    %c0_4 = arith.constant 0 : index
    %c0_5 = arith.constant 0 : index
    %4 = vector.load %arg4[%c0_4, %c0_5] : memref<32x32xf32, #tpu.memory_space<vmem>>, vector<32x32xf32>
    %cst_6 = arith.constant dense<0.000000e+00> : vector<32x256xf32>
    %5 = tpu.matmul %4, %1, %cst_6 {dimension_numbers = #tpu.dot_dimension_numbers<[1], [0], [0], [1], [0, 0, 1, 1], [], []>, precision = #tpu.contract_precision<fp32>} : vector<32x32xf32>, vector<32x256xf32>, vector<32x256xf32> -> vector<32x256xf32>
    %cst_7 = arith.constant 5.000000e-01 : f32
    %6 = vector.broadcast %cst_7 : f32 to vector<32x256xf32>
    %7 = arith.mulf %6, %3 : vector<32x256xf32>
    %cst_8 = arith.constant 0.707106769 : f32
    %8 = vector.broadcast %cst_8 : f32 to vector<32x256xf32>
    %9 = arith.mulf %3, %8 : vector<32x256xf32>
    %10 = math.erf %9 : vector<32x256xf32>
    %cst_9 = arith.constant 1.000000e+00 : f32
    %11 = vector.broadcast %cst_9 : f32 to vector<32x256xf32>
    %12 = arith.addf %11, %10 : vector<32x256xf32>
    %13 = arith.mulf %7, %12 : vector<32x256xf32>
    %14 = arith.mulf %13, %5 : vector<32x256xf32>
    %c0_10 = arith.constant 0 : index
    %c0_11 = arith.constant 0 : index
    %c0_12 = arith.constant 0 : index
    %15 = vector.load %arg5[%c0_10, %c0_11, %c0_12] : memref<1x32x256xf32, #tpu.memory_space<vmem>>, vector<1x32x256xf32>
    %16 = vector.shape_cast %15 : vector<1x32x256xf32> to vector<32x256xf32>
    %17 = vector.shape_cast %14 : vector<32x256xf32> to vector<1x32x256xf32>
    tpu.vector_store %arg5[%c0_10, %c0_11, %c0_12], %17 {strides = array<i32>} : memref<1x32x256xf32, #tpu.memory_space<vmem>>, vector<1x32x256xf32>,
    return
  }
  func.func @transform_0(%arg0: i32, %arg1: i32) -> (i32, i32, i32) {
    %c0_i32 = arith.constant 0 : i32
    %c0_i32_0 = arith.constant 0 : i32
    return %arg0, %c0_i32, %arg1 : i32, i32, i32
  }
  func.func @transform_1(%arg0: i32, %arg1: i32) -> (i32, i32) {
    %c0_i32 = arith.constant 0 : i32
    %c0_i32_0 = arith.constant 0 : i32
    %c0_i32_1 = arith.constant 0 : i32
    return %c0_i32, %c0_i32_0 : i32, i32
  }
  func.func @transform_2(%arg0: i32, %arg1: i32) -> (i32, i32) {
    %c0_i32 = arith.constant 0 : i32
    %c0_i32_0 = arith.constant 0 : i32
    %c0_i32_1 = arith.constant 0 : i32
    return %c0_i32, %c0_i32_0 : i32, i32
  }
  func.func @transform_3(%arg0: i32, %arg1: i32) -> (i32, i32, i32) {
    %c0_i32 = arith.constant 0 : i32
    %c0_i32_0 = arith.constant 0 : i32
    return %arg0, %c0_i32, %arg1 : i32, i32, i32
  }
}

</mosaic_0001>

<bundles_post_ra>
// kernel: tpu_custom_call.1
= control target key start
LH: loop header
LB: loop body
LE: loop exit
PB: predicated region body
PF: predicated region fallthrough
CT: control target
= control target key end

     0   :  { %s3202_s0 = inlined_call_operand.hbm [shape: f32[2,32,256], index: 0, kind: input, shape index: {}]   ;;  %s3203_s1 = inlined_call_operand.hbm [shape: f32[32,32], index: 1, kind: input, shape index: {}]   ;;  %s3204_s2 = inlined_call_operand.hbm [shape: f32[32,32], index: 2, kind: input, shape index: {}]   ;;  %s3205_s3 = inlined_call_operand.hbm [shape: f32[2,32,256], index: 3, kind: output, shape index: {}]  }
   0x1   :  { %3206 = sst [smem:[#allocation12_spill]] %s3203_s1 }
   0x2   :  { %8 = vsyncpa [#allocation3], 0 }
   0x3   :  { %10 = vsyncpa [#allocation3 + $0x1], 0 }
   0x4   :  { %11 = vsyncpa [#allocation6], 0 }
   0x5   :  { %12 = vsyncpa [#allocation4], 0 }
   0x6   :  { %14 = vsyncpa [#allocation4 + $0x1], 0  ;;  %s2229_s12 = smov 0   ;;  %s2231_s13 = smov 0  }
   0x7   :  { %s2233_s14 = smov 0   ;;  %s2235_s15 = smov 0  }
   0x8   :  { %s2237_s16 = smov 0   ;;  %s2239_s17 = smov 0  }
   0x9 LB: > { %s1889_s18 = sadd.s32 4294967295, %s2199_s17   ;;  %s1890_s19 = sadd.s32 4294967294, %s2199_s17   ;;  %s2199_s17 = sphi %s2239_s17, %s20_s17   ;;  %s2195_s16 = sphi %s2237_s16, %s3233_s16   ;;  %s2191_s15 = sphi %s2235_s15, %s3232_s15   ;;  %s2187_s14 = sphi %s2233_s14, %s3231_s14   ;;  %s2183_s13 = sphi %s2231_s13, %s3230_s13   ;;  %s2179_s12 = sphi %s2229_s12, %s3229_s12  }
   0xa   : > { %p54_p0 = scmp.ne.s32.totalorder %s2183_s13, %s2179_s12  ;;  %p2263_p1 = scmp.eq.s32.totalorder %s1889_s18, 0 }
   0xb   : > { %p2267_p2 = scmp.eq.s32.totalorder %s1889_s18, 1  ;;  %p128_p3 = scmp.eq.s32.totalorder %s1890_s19, 1 }
   0xc   : > { %p2273_p4 = por %p2263_p1, %p54_p0  ;;  %p1891_p5 = scmp.ge.s32.totalorder %s2199_s17, 1 }
   0xd   : > { %p2278_p6 = por %p128_p3, %p54_p0  ;;  %p135_p7 = scmp.lt.s32.totalorder %s2199_s17, 3 }
   0xe   : > { %s3211_s1 = sld [smem:[#allocation12_spill]]  ;;  %s2201_s28 = smov [#allocation5]  }
   0xf   : > { %p2286_p8 = pnand %p1891_p5, %p135_p7  ;;  %s148_s29 = sshll.u32 %s2201_s28, 4  ;;  %s149_s29 = int_to_ptr.vmem [resolvable:$true] %s148_s29 }
  0x10   : > { %p1894_p11 = scmp.ge.s32.totalorder %s2199_s17, 2  ;;  %s160_s5 = sshll.u32 %s3204_s2, 4  ;;  %s161_s5 = int_to_ptr.hbm [resolvable:$true] %s160_s5 }
  0x11   : > { %p1930_p9 = pneg %p2286_p8  ;;  %s2202_s6 = smov 128  }
  0x12   : > { %s2203_s7 = smov 8   ;;  %s2204_s8 = smov [#allocation7]  }
  0x13   : > { %p1931_p10 = pnand %p1930_p9, %p2263_p1  ;;  %s162_s9 = sshll.u32 %s2204_s8, 4  ;;  %s163_s9 = int_to_ptr.vmem [resolvable:$true] %s162_s9 }
  0x14   : > { %s146_s26 = sshll.u32 %s3211_s1, 4  ;;  %s32_s10 = sadd.s32 1, %s2195_s16  ;;  %s147_s26 = int_to_ptr.hbm [resolvable:$true] %s146_s26 }
  0x15   : > { %1933 = dma.hbm_to_vmem [thread:$0]  (!%p1931_p10), %s147_s26, 512, %s149_s29, [#allocation6], %s2202_s6, %s2202_s6, %s2203_s7  }
  0x16   : > { %1936 = dma.hbm_to_vmem [thread:$0]  (!%p1931_p10), %s161_s5, 512, %s163_s9, [#allocation6], %s2202_s6, %s2202_s6, %s2203_s7  }
  0x17   : > { %s41_s11 = sadd.s32 1, %s2187_s14  ;;  %p34_p12 = scmp.ge.s32.totalorder %s32_s10, 2 }
  0x18   : > { %p48_p13 = scmp.ne.s32.totalorder %s2187_s14, %s2183_s13  ;;  %p49_p0 = scmp.eq.s32.totalorder %s2199_s17, 0 }
  0x19   : > { %p1947_p3 = scmp.lt.s32.totalorder %s2199_s17, 2  ;;  %s3235_s10 = smov (%p34_p12, %s32_s10), 0 }
  0x1a   : > { %p2306_p5 = por %p49_p0, %p48_p13  ;;  %p2312_p7 = por %p2267_p2, %p48_p13 }
  0x1b   : > { %s36_s24 = ssub.s32 %s2195_s16, %s3235_s10  ;;  %s176_s25 = sand.u32 1, %s2187_s14  }
  0x1c   : > { %p39_p9 = scmp.eq.s32.totalorder %s36_s24, 0  ;;  %s1895_s26 = sshll.u32 %s176_s25, 6 }
  0x1d   : > { %s1916_s28 = sshll.u32 %s2195_s16, 6  ;;  %s180_s7 = scalar_lea.vmem [#allocation2], %s1895_s26 }
  0x1e   : > { %s2321_s29 = scalar_select %p39_p9, %s2187_s14, %s41_s11  }
  0x1f   : > { %s187_s5 = scalar_lea.hbm %s3202_s0, %s1916_s28  ;;  %s190_s8 = sshll.u32 %s180_s7, 4  ;;  %s191_s8 = int_to_ptr.vmem [resolvable:$true] %s190_s8 }
  0x20   : > { %s188_s6 = sshll.u32 %s187_s5, 4  ;;  %p1938_p2 = pnand %p1947_p3, %p2306_p5  ;;  %s189_s6 = int_to_ptr.hbm [resolvable:$true] %s188_s6 }
  0x21   : > { %s177_s21 = scalar_lea.sflag [#allocation3], %s176_s25  ;;  %s2205_s9 = smov 256  }
  0x22   : > { %s2206_s1 = smov 16   ;;  %202 = sbr.rel (%p2286_p8) target bundleno = 382 (0x17e), region = 32 }
  0x23   : > { %1940 = dma.hbm_to_vmem [thread:$0]  (!%p1938_p2), %s189_s6, 1024, %s191_s8, %s177_s21, %s2205_s9, %s2205_s9, %s2206_s1  }
  0x24   : > { %s2333_s11 = sand.u32 (!%p2286_p8), 1, %s2183_s13  }
  0x25   : > { %s1899_s24 = sshll.u32 (!%p2286_p8), %s2333_s11, 6  ;;  %s205_s26 = scalar_lea.sflag (!%p2286_p8), [#allocation3], %s2333_s11 }
  0x26   : > { %s2339_s18 = scalar_lea.vmem (!%p2286_p8), [#allocation2], %s1899_s24 }
  0x27   : > { %2166 = dma.done.wait (%p2273_p4), %s205_s26, 1024  }
  0x28   : > { %2168 = vsyncadd (%p2273_p4), %s205_s26, 4294966272 }
  0x29   : > { %2170 = dma.done.wait (%p2263_p1), [#allocation6], 1024  }
  0x2a   : > { %2172 = vsyncadd (%p2263_p1), [#allocation6], 4294966272  ;;  %vm256_vm0 = vcmask 261120   ;;  %v250_v0 = vld [vmem:[%s2339_s18 + $0x30] sm:$0xff]  ;;  %v248_v1 = vld [vmem:[%s2339_s18 + $0x20] sm:$0xff]  ;;  %s3052_s1 = scalar_lea.vmem [#allocation8], %s1899_s24 }
  0x2b   : > { %v246_v2 = vld [vmem:[%s2339_s18 + $0x10] sm:$0xff]  ;;  %v2352_v3 = vand.u32 4294901760, %v250_v0  ;;  %v2354_v4 = vand.u32 4294901760, %v248_v1  ;;  %v244_v6 = vld [vmem:[%s2339_s18] sm:$0xff]  ;;  %v251_v8 = vld [vmem:[%s2339_s18 + $0x38] sm:$0xff]  ;;  %s1917_s20 = sshll.u32 %s2191_s15, 6 }
  0x2c   : > { %v2356_v5 = vand.u32 4294901760, %v246_v2  ;;  %v252_v7 = vld [vmem:[#allocation5] sm:$0xff]  ;;  %v2360_v9 = vand.u32 4294901760, %v244_v6  ;;  %v2363_v11 = vand.u32 4294901760, %v251_v8  ;;  %v253_v12 = vld [vmem:[#allocation5 + $0x8] sm:$0xff]  ;;  %v254_v38 = vld [vmem:[#allocation5 + $0x10] sm:$0xff]  ;;  %s1779_s25 = scalar_lea.hbm %s3205_s3, %s1917_s20 }
  0x2d   : > { %v258_v10 = vsel %vm256_vm0, %v252_v7, 0  ;;  %v249_v13 = vld [vmem:[%s2339_s18 + $0x28] sm:$0xff]  ;;  %282 = vmatpush.msra.mxu0 %v2352_v3  ;;  %v2368_v14 = vsub.f32 %v250_v0, %v2352_v3  ;;  %433 = vmatpush.msra.mxu3 %v2352_v3  ;;  %v2372_v15 = vsub.f32 %v248_v1, %v2354_v4  ;;  %v261_v20 = vsel %vm256_vm0, %v253_v12, 0  ;;  %v247_v39 = vld [vmem:[%s2339_s18 + $0x18] sm:$0xff]  ;;  %s1780_s28 = sshll.u32 %s3052_s1, 4  ;;  %s1782_s15 = sshll.u32 %s1779_s25, 4  ;;  %s1781_s28 = int_to_ptr.vmem [resolvable:$true] %s1780_s28  ;;  %s1783_s15 = int_to_ptr.hbm [resolvable:$true] %s1782_s15 }
  0x2e   : > { %v2375_v16 = vsub.f32 %v246_v2, %v2356_v5  ;;  %v2377_v17 = vand.u32 4294901760, %v258_v10  ;;  %v2380_v18 = vsub.f32 %v244_v6, %v2360_v9  ;;  %v2383_v19 = vsub.f32 %v251_v8, %v2363_v11  ;;  %v255_v46 = vld [vmem:[#allocation5 + $0x18] sm:$0xff]  ;;  %v245_v47 = vld [vmem:[%s2339_s18 + $0x8] sm:$0xff]  ;;  %s1766_s30 = scalar_lea.sflag [#allocation4], %s2333_s11  ;;  %s2127_s4 = sshra.s32 %s1783_s15, 4  ;;  %s2128_s4 = int_to_ptr.hbm [resolvable:$true] %s2127_s4 }
  0x2f   : > { %v2386_v21 = vand.u32 4294901760, %v249_v13  ;;  %284 = vmatpush.msra.mxu0 %v2354_v4  ;;  %389 = vmatpush.msra.mxu2 %v2368_v14  ;;  %v2391_v22 = vand.u32 4294901760, %v2368_v14  ;;  %v2397_v24 = vand.u32 4294901760, %v2372_v15  ;;  %v2409_v28 = vand.u32 4294901760, %v261_v20  ;;  %s2129_s5 = scalar_lea.hbm %s2128_s4, 64  ;;  %s2133_s8 = scalar_lea.hbm %s3205_s3, 128 }
  0x30   : > { %v2394_v23 = vsub.f32 %v258_v10, %v2377_v17  ;;  %v2400_v25 = vand.u32 4294901760, %v2375_v16  ;;  %435 = vmatpush.msra.mxu3 %v2354_v4  ;;  %v2404_v26 = vand.u32 4294901760, %v2383_v19  ;;  %v2407_v27 = vand.u32 4294901760, %v2380_v18  ;;  %p2130_p1 = scmp.ne.s32.totalorder %s2128_s4, %s2129_s5  ;;  %p2134_p10 = scmp.lt.s32.totalorder %s2128_s4, %s3205_s3 }
  0x31   : > { %v2412_v29 = vsub.f32 %v249_v13, %v2386_v21  ;;  %286 = vmatpush.msra.mxu0 %v2356_v5  ;;  %392 = vmatpush.msra.mxu2 %v2372_v15  ;;  %v337_v30 = vsub.f32 %v2368_v14, %v2391_v22  ;;  %v343_v32 = vsub.f32 %v2372_v15, %v2397_v24  ;;  %v264_v50 = vsel %vm256_vm0, %v254_v38, 0  ;;  %p2135_p12 = scmp.lt.s32.totalorder %s2133_s8, %s2129_s5 }
  0x32   : > { %v2419_v31 = vand.u32 4294901760, %v2394_v23  ;;  %v349_v33 = vsub.f32 %v2375_v16, %v2400_v25  ;;  %437 = vmatpush.msra.mxu3 %v2356_v5  ;;  %v615_v34 = vsub.f32 %v2383_v19, %v2404_v26  ;;  %v355_v35 = vsub.f32 %v2380_v18, %v2407_v27  ;;  %p2131_p4 = pnand %p2130_p1, %p2312_p7 }
  0x33   : > { %v2431_v36 = vsub.f32 %v261_v20, %v2409_v28  ;;  %v2434_v37 = vand.u32 4294901760, %v2412_v29  ;;  %288 = vmatpush.msra.mxu0 %v2360_v9  ;;  %v2438_v40 = vand.u32 4294901760, %v337_v30  ;;  %395 = vmatpush.msra.mxu2 %v2375_v16  ;;  %v2443_v42 = vand.u32 4294901760, %v343_v32  ;;  %p2136_p13 = por %p2135_p12, %p2134_p10 }
  0x34   : > { %v292_v41 = vsub.f32 %v2394_v23, %v2419_v31  ;;  %439 = vmatpush.msra.mxu3 %v2360_v9  ;;  %v2447_v43 = vand.u32 4294901760, %v615_v34  ;;  %v2459_v49 = vand.u32 4294901760, %v349_v33  ;;  %v2462_v51 = vand.u32 4294901760, %v247_v39  ;;  %p2132_p8 = pneg %p2131_p4 }
  0x35   : > { %480 = vmatpush.msrb.mxu0 %v2391_v22  ;;  %v2450_v44 = vand.u32 4294901760, %v2431_v36  ;;  %v621_v45 = vsub.f32 %v2412_v29, %v2434_v37  ;;  %339 = vmatpush.msra.mxu1 %v2438_v40  ;;  %v2466_v52 = vand.u32 4294901760, %v355_v35  ;;  %v2470_v54 = vand.u32 4294901760, %v264_v50 }
  0x36   : > { %v2456_v48 = vand.u32 4294901760, %v292_v41  ;;  %398 = vmatpush.msra.mxu2 %v2380_v18  ;;  %443 = vmatmul.f32.vlgmr.msra.gmra.mxu3 %v2419_v31  ;;  %v2477_v56 = vsub.f32 %v247_v39, %v2462_v51  ;;  %v267_v57 = vsel %vm256_vm0, %v255_v46, 0  ;;  %v2480_v58 = vand.u32 4294901760, %v245_v47  ;;  %p2137_p0 = pnand %p2136_p13, %p2132_p8 }
  0x37   : > { %401 = vmatmul.f32.vlgmr.msra.gmra.mxu2 %v2394_v23  ;;  %v2468_v53 = vand.u32 4294901760, %v621_v45  ;;  %345 = vmatpush.msra.mxu1 %v2443_v42  ;;  %v300_v55 = vsub.f32 %v2431_v36, %v2450_v44  ;;  %v2485_v59 = vsub.f32 %v264_v50, %v2470_v54  ;;  %v2497_v62 = vand.u32 4294901760, %v267_v57 }
  0x38   : > { %294 = vmatmul.f32.vlgmr.msra.gmra.mxu0 %v2456_v48  ;;  %560 = vmatpush.msrb.mxu2 %v2363_v11  ;;  %v2490_v60 = vand.u32 4294901760, %v2477_v56  ;;  %v2493_v61 = vsub.f32 %v245_v47, %v2480_v58 }
  0x39   : > { %617 = vmatpush.msrb.mxu3 %v2447_v43  ;;  %351 = vmatpush.msra.mxu1 %v2459_v49  ;;  %v2500_v63 = vand.u32 4294901760, %v300_v55  ;;  %v2503_v0 = vand.u32 4294901760, %v2485_v59  ;;  %v2526_v10 = vsub.f32 %v267_v57, %v2497_v62 }
  0x3a   : > { %484 = vmatpush.msrb.mxu0 %v2397_v24  ;;  %562 = vmatpush.msrb.mxu2 %v2386_v21  ;;  %v627_v1 = vsub.f32 %v2477_v56, %v2490_v60  ;;  %v2509_v2 = vand.u32 4294901760, %v2493_v61 }
  0x3b   : > { %623 = vmatpush.msrb.mxu3 %v2468_v53  ;;  %357 = vmatpush.msra.mxu1 %v2466_v52  ;;  %v308_v8 = vsub.f32 %v2485_v59, %v2503_v0  ;;  %v2537_v20 = vand.u32 4294901760, %v2526_v10 }
  0x3c   : > { %488 = vmatpush.msrb.mxu0 %v2400_v25  ;;  %359 = vmatmul.f32.vlgmr.msra.gmra.mxu1 %v2377_v17  ;;  %v2514_v6 = vand.u32 4294901760, %v627_v1  ;;  %v633_v7 = vsub.f32 %v2493_v61, %v2509_v2 }
  0x3d   : > { %564 = vmatpush.msrb.mxu2 %v2462_v51  ;;  %523 = vmatpush.msrb.mxu1 %v2352_v3  ;;  %v309_v13 = vand.u32 4294901760, %v308_v8  ;;  %v316_v30 = vsub.f32 %v2526_v10, %v2537_v20 }
  0x3e   : > { %492 = vmatpush.msrb.mxu0 %v2407_v27  ;;  %449 = vmatmul.f32.gmra.mxu3 %v2450_v44  ;;  %v2528_v12 = vand.u32 4294901760, %v633_v7 }
  0x3f   : > { %406 = vmatmul.f32.gmra.mxu2 %v2431_v36  ;;  %525 = vmatpush.msrb.mxu1 %v2354_v4  ;;  %v317_v32 = vand.u32 4294901760, %v316_v30 }
  0x40   : > { %302 = vmatmul.f32.gmra.mxu0 %v2500_v63  ;;  %629 = vmatpush.msrb.mxu3 %v2514_v6 }
  0x41   : > { %566 = vmatpush.msrb.mxu2 %v2480_v58  ;;  %527 = vmatpush.msrb.mxu1 %v2356_v5 }
  0x42   : > { %635 = vmatpush.msrb.mxu3 %v2528_v12  ;;  %667 = vmatpush.msra.mxu0 %v2383_v19 }
  0x43   : > { %758 = vmatpush.msra.mxu2 %v2404_v26  ;;  %529 = vmatpush.msrb.mxu1 %v2360_v9 }
  0x44   : > { %801 = vmatpush.msra.mxu3 %v2363_v11  ;;  %363 = vmatmul.f32.gmra.mxu1 %v2409_v28 }
  0x45   : > { %762 = vmatpush.msra.mxu2 %v2434_v37  ;;  %711 = vmatpush.msra.mxu1 %v2363_v11 }
  0x46   : > { %670 = vmatpush.msra.mxu0 %v2412_v29  ;;  %455 = vmatmul.f32.gmra.mxu3 %v2503_v0 }
  0x47   : > { %411 = vmatmul.f32.gmra.mxu2 %v2485_v59  ;;  %803 = vmatpush.msra.mxu3 %v2386_v21 }
  0x48   : > { %310 = vmatmul.f32.gmra.mxu0 %v309_v13  ;;  %713 = vmatpush.msra.mxu1 %v2386_v21 }
  0x49   : > { %766 = vmatpush.msra.mxu2 %v2490_v60  ;;  %673 = vmatpush.msra.mxu0 %v2477_v56 }
  0x4a   : > { %805 = vmatpush.msra.mxu3 %v2462_v51  ;;  %715 = vmatpush.msra.mxu1 %v2462_v51 }
  0x4b   : > { %770 = vmatpush.msra.mxu2 %v2509_v2  ;;  %676 = vmatpush.msra.mxu0 %v2493_v61 }
  0x4c   : > { %807 = vmatpush.msra.mxu3 %v2480_v58  ;;  %367 = vmatmul.f32.gmra.mxu1 %v2470_v54 }
  0x4d   : > { %717 = vmatpush.msra.mxu1 %v2480_v58 }
  0x4e   : > { %461 = vmatmul.f32.gmra.mxu3 %v2537_v20 }
  0x4f   : > { %416 = vmatmul.f32.gmra.mxu2 %v2526_v10 }
  0x50   : > { %318 = vmatmul.f32.gmra.mxu0 %v317_v32 }
  0x54   : > { %371 = vmatmul.f32.gmra.mxu1 %v2497_v62 }
  0x56   : > { %637 = vmatmul.f32.vlgmr.msrb.gmra.mxu3 %v2377_v17 }
  0x57   : > { %572 = vmatmul.f32.vlgmr.msrb.gmra.mxu2 %v2456_v48  ;;  %1005 = vmatpush.msrb.mxu3 %v2352_v3 }
  0x58   : > { %494 = vmatmul.f32.vlgmr.msrb.gmra.mxu0 %v2377_v17  ;;  %961 = vmatpush.msrb.mxu2 %v2368_v14  ;;  %v825_v14 = vld [vmem:[#allocation7] sm:$0xff] }
  0x59   : > { %854 = vmatpush.msrb.mxu0 %v2352_v3  ;;  %1007 = vmatpush.msrb.mxu3 %v2354_v4 }
  0x5a   : > { %964 = vmatpush.msrb.mxu2 %v2372_v15  ;;  %v830_v15 = vsel %vm256_vm0, %v825_v14, 0 }
  0x5b   : > { %856 = vmatpush.msrb.mxu0 %v2354_v4  ;;  %1009 = vmatpush.msrb.mxu3 %v2356_v5 }
  0x5c   : > { %967 = vmatpush.msrb.mxu2 %v2375_v16  ;;  %531 = vmatmul.f32.vlgmr.msrb.gmra.mxu1 %v2377_v17  ;;  %v826_v16 = vld [vmem:[#allocation7 + $0x8] sm:$0xff] }
  0x5d   : > { %858 = vmatpush.msrb.mxu0 %v2356_v5  ;;  %911 = vmatpush.msrb.mxu1 %v2438_v40 }
  0x5e   : > { %641 = vmatmul.f32.gmra.mxu3 %v2409_v28  ;;  %970 = vmatpush.msrb.mxu2 %v2380_v18 }
  0x5f   : > { %580 = vmatmul.f32.gmra.mxu2 %v2500_v63  ;;  %917 = vmatpush.msrb.mxu1 %v2443_v42 }
  0x60   : > { %498 = vmatmul.f32.gmra.mxu0 %v2409_v28  ;;  %1011 = vmatpush.msrb.mxu3 %v2360_v9 }
  0x61   : > { %860 = vmatpush.msrb.mxu0 %v2360_v9  ;;  %923 = vmatpush.msrb.mxu1 %v2459_v49 }
  0x63   : > { %929 = vmatpush.msrb.mxu1 %v2466_v52 }
  0x64   : > { %535 = vmatmul.f32.gmra.mxu1 %v2409_v28 }
  0x66   : > { %645 = vmatmul.f32.gmra.mxu3 %v2470_v54 }
  0x67   : > { %588 = vmatmul.f32.gmra.mxu2 %v309_v13 }
  0x68   : > { %502 = vmatmul.f32.gmra.mxu0 %v2470_v54 }
  0x6c   : > { %539 = vmatmul.f32.gmra.mxu1 %v2470_v54 }
  0x6e   : > { %649 = vmatmul.f32.gmra.mxu3 %v2497_v62 }
  0x6f   : > { %596 = vmatmul.f32.gmra.mxu2 %v317_v32 }
  0x70   : > { %506 = vmatmul.f32.gmra.mxu0 %v2497_v62 }
  0x74   : > { %543 = vmatmul.f32.gmra.mxu1 %v2497_v62 }
  0x76   : > { %809 = vmatmul.f32.vlgmr.msra.gmra.mxu3 %v2377_v17 }
  0x77   : > { %772 = vmatmul.f32.vlgmr.msra.gmra.mxu2 %v2377_v17  ;;  %1189 = vmatpush.msra.mxu3 %v2447_v43 }
  0x78   : > { %679 = vmatmul.f32.vlgmr.msra.gmra.mxu0 %v2394_v23  ;;  %1132 = vmatpush.msra.mxu2 %v2363_v11 }
  0x79   : > { %1052 = vmatpush.msra.mxu0 %v2391_v22  ;;  %1195 = vmatpush.msra.mxu3 %v2468_v53 }
  0x7a   : > { %1134 = vmatpush.msra.mxu2 %v2386_v21 }
  0x7b   : > { %1056 = vmatpush.msra.mxu0 %v2397_v24  ;;  %1201 = vmatpush.msra.mxu3 %v2514_v6 }
  0x7c   : > { %1136 = vmatpush.msra.mxu2 %v2462_v51  ;;  %721 = vmatmul.f32.vlgmr.msra.gmra.mxu1 %v2419_v31  ;;  %v828_v31 = vld [vmem:[#allocation7 + $0x18] sm:$0xff] }
  0x7d   : > { %1060 = vmatpush.msra.mxu0 %v2400_v25  ;;  %1095 = vmatpush.msra.mxu1 %v2352_v3  ;;  %v2616_v3 = vand.u32 4294901760, %v830_v15  ;;  %v839_v35 = vsel %vm256_vm0, %v828_v31, 0 }
  0x7e   : > { %813 = vmatmul.f32.gmra.mxu3 %v2409_v28  ;;  %1138 = vmatpush.msra.mxu2 %v2480_v58  ;;  %v2665_v39 = vand.u32 4294901760, %v839_v35 }
  0x7f   : > { %776 = vmatmul.f32.gmra.mxu2 %v2409_v28  ;;  %1097 = vmatpush.msra.mxu1 %v2354_v4  ;;  %v2624_v4 = vsub.f32 %v830_v15, %v2616_v3 }
  0x80   : > { %684 = vmatmul.f32.gmra.mxu0 %v2431_v36  ;;  %1207 = vmatpush.msra.mxu3 %v2528_v12 }
  0x81   : > { %1064 = vmatpush.msra.mxu0 %v2407_v27  ;;  %1099 = vmatpush.msra.mxu1 %v2356_v5  ;;  %v833_v5 = vsel %vm256_vm0, %v826_v16, 0  ;;  %v2628_v17 = vand.u32 4294901760, %v2624_v4 }
  0x82   : > { %v2630_v18 = vand.u32 4294901760, %v833_v5 }
  0x83   : > { %1101 = vmatpush.msra.mxu1 %v2360_v9  ;;  %v827_v9 = vld [vmem:[#allocation7 + $0x10] sm:$0xff]  ;;  %v864_v22 = vsub.f32 %v2624_v4, %v2628_v17 }
  0x84   : > { %727 = vmatmul.f32.gmra.mxu1 %v2450_v44  ;;  %v2639_v23 = vsub.f32 %v833_v5, %v2630_v18  ;;  %v836_v24 = vsel %vm256_vm0, %v827_v9, 0 }
  0x85   : > { %v865_v25 = vand.u32 4294901760, %v864_v22  ;;  %v2645_v28 = vand.u32 4294901760, %v836_v24 }
  0x86   : > { %817 = vmatmul.f32.gmra.mxu3 %v2470_v54  ;;  %v2643_v27 = vand.u32 4294901760, %v2639_v23 }
  0x87   : > { %780 = vmatmul.f32.gmra.mxu2 %v2470_v54  ;;  %v2653_v34 = vsub.f32 %v836_v24, %v2645_v28 }
  0x88   : > { %689 = vmatmul.f32.gmra.mxu0 %v2485_v59  ;;  %v872_v33 = vsub.f32 %v2639_v23, %v2643_v27 }
  0x89   : > { %v2663_v38 = vand.u32 4294901760, %v2653_v34 }
  0x8a   : > { %v873_v36 = vand.u32 4294901760, %v872_v33 }
  0x8c   : > { %733 = vmatmul.f32.gmra.mxu1 %v2503_v0 }
  0x8e   : > { %821 = vmatmul.f32.gmra.mxu3 %v2497_v62 }
  0x8f   : > { %784 = vmatmul.f32.gmra.mxu2 %v2497_v62 }
  0x90   : > { %694 = vmatmul.f32.gmra.mxu0 %v2526_v10 }
  0x94   : > { %739 = vmatmul.f32.gmra.mxu1 %v2537_v20 }
  0x96   : > { %1015 = vmatmul.f32.vlgmr.msrb.gmra.mxu3 %v2628_v17 }
  0x97   : > { %973 = vmatmul.f32.vlgmr.msrb.gmra.mxu2 %v2624_v4  ;;  %1373 = vmatpush.msrb.mxu3 %v2363_v11 }
  0x98   : > { %866 = vmatmul.f32.vlgmr.msrb.gmra.mxu0 %v865_v25  ;;  %1330 = vmatpush.msrb.mxu2 %v2404_v26  ;;  %v2677_v26 = vsub.f32 %v839_v35, %v2665_v39 }
  0x99   : > { %1239 = vmatpush.msrb.mxu0 %v2383_v19  ;;  %1375 = vmatpush.msrb.mxu3 %v2386_v21  ;;  %v880_v19 = vsub.f32 %v2653_v34, %v2663_v38 }
  0x9a   : > { %1334 = vmatpush.msrb.mxu2 %v2434_v37 }
  0x9b   : > { %1242 = vmatpush.msrb.mxu0 %v2412_v29  ;;  %1377 = vmatpush.msrb.mxu3 %v2462_v51  ;;  %v2685_v29 = vand.u32 4294901760, %v2677_v26 }
  0x9c   : > { %1338 = vmatpush.msrb.mxu2 %v2490_v60  ;;  %931 = vmatmul.f32.vlgmr.msrb.gmra.mxu1 %v2616_v3 }
  0x9d   : > { %1245 = vmatpush.msrb.mxu0 %v2477_v56  ;;  %1283 = vmatpush.msrb.mxu1 %v2363_v11  ;;  %v881_v11 = vand.u32 4294901760, %v880_v19 }
  0x9e   : > { %1021 = vmatmul.f32.gmra.mxu3 %v2643_v27  ;;  %1342 = vmatpush.msrb.mxu2 %v2509_v2 }
  0x9f   : > { %978 = vmatmul.f32.gmra.mxu2 %v2639_v23  ;;  %1285 = vmatpush.msrb.mxu1 %v2386_v21  ;;  %v888_v21 = vsub.f32 %v2677_v26, %v2685_v29 }
  0xa0   : > { %874 = vmatmul.f32.gmra.mxu0 %v873_v36  ;;  %1379 = vmatpush.msrb.mxu3 %v2480_v58 }
  0xa1   : > { %1248 = vmatpush.msrb.mxu0 %v2493_v61  ;;  %1287 = vmatpush.msrb.mxu1 %v2462_v51  ;;  %v889_v37 = vand.u32 4294901760, %v888_v21 }
  0xa3   : > { %1289 = vmatpush.msrb.mxu1 %v2480_v58 }
  0xa4   : > { %935 = vmatmul.f32.gmra.mxu1 %v2630_v18 }
  0xa6   : > { %1027 = vmatmul.f32.gmra.mxu3 %v2663_v38 }
  0xa7   : > { %983 = vmatmul.f32.gmra.mxu2 %v2653_v34 }
  0xa8   : > { %882 = vmatmul.f32.gmra.mxu0 %v881_v11 }
  0xac   : > { %939 = vmatmul.f32.gmra.mxu1 %v2645_v28 }
  0xae   : > { %1033 = vmatmul.f32.gmra.mxu3 %v2685_v29 }
  0xaf   : > { %988 = vmatmul.f32.gmra.mxu2 %v2677_v26 }
  0xb0   : > { %890 = vmatmul.f32.gmra.mxu0 %v889_v37 }
  0xb4   : > { %943 = vmatmul.f32.gmra.mxu1 %v2665_v39 }
  0xb5   : > { %v295_v40 = vpop.f32.mrf.mxu0 }
  0xb6   : > { %1209 = vmatmul.f32.vlgmr.msra.gmra.mxu3 %v2616_v3 }
  0xb7   : > { %1144 = vmatmul.f32.vlgmr.msra.gmra.mxu2 %v865_v25 }
  0xb8   : > { %1066 = vmatmul.f32.vlgmr.msra.gmra.mxu0 %v2616_v3 }
  0xb9   : > { %v360_v41 = vpop.f32.mrf.mxu1  ;;  %v444_v44 = vpop.f32.mrf.mxu3 }
  0xba   : > { %v402_v42 = vpop.f32.mrf.mxu2  ;;  %v361_v43 = vadd.f32 %v360_v41, %v295_v40 }
  0xbc   : > { %v403_v46 = vadd.f32 %v402_v42, %v361_v43  ;;  %1103 = vmatmul.f32.vlgmr.msra.gmra.mxu1 %v2616_v3 }
  0xbd   : > { %v303_v45 = vpop.f32.mrf.mxu0 }
  0xbe   : > { %v445_v47 = vadd.f32 %v444_v44, %v403_v46  ;;  %1213 = vmatmul.f32.gmra.mxu3 %v2630_v18 }
  0xbf   : > { %1152 = vmatmul.f32.gmra.mxu2 %v873_v36 }
  0xc0   : > { %1070 = vmatmul.f32.gmra.mxu0 %v2630_v18 }
  0xc1   : > { %v364_v48 = vpop.f32.mrf.mxu1  ;;  %v450_v51 = vpop.f32.mrf.mxu3 }
  0xc2   : > { %v407_v49 = vpop.f32.mrf.mxu2  ;;  %v365_v50 = vadd.f32 %v364_v48, %v303_v45 }
  0xc4   : > { %v408_v53 = vadd.f32 %v407_v49, %v365_v50  ;;  %1107 = vmatmul.f32.gmra.mxu1 %v2630_v18 }
  0xc5   : > { %v311_v52 = vpop.f32.mrf.mxu0 }
  0xc6   : > { %v451_v54 = vadd.f32 %v450_v51, %v408_v53  ;;  %1217 = vmatmul.f32.gmra.mxu3 %v2645_v28 }
  0xc7   : > { %1160 = vmatmul.f32.gmra.mxu2 %v881_v11 }
  0xc8   : > { %1074 = vmatmul.f32.gmra.mxu0 %v2645_v28 }
  0xc9   : > { %v368_v55 = vpop.f32.mrf.mxu1  ;;  %v456_v58 = vpop.f32.mrf.mxu3 }
  0xca   : > { %v412_v56 = vpop.f32.mrf.mxu2  ;;  %v369_v57 = vadd.f32 %v368_v55, %v311_v52 }
  0xcc   : > { %v413_v60 = vadd.f32 %v412_v56, %v369_v57  ;;  %1111 = vmatmul.f32.gmra.mxu1 %v2645_v28 }
  0xcd   : > { %v319_v59 = vpop.f32.mrf.mxu0 }
  0xce   : > { %v457_v61 = vadd.f32 %v456_v58, %v413_v60  ;;  %1221 = vmatmul.f32.gmra.mxu3 %v2665_v39 }
  0xcf   : > { %1168 = vmatmul.f32.gmra.mxu2 %v889_v37 }
  0xd0   : > { %1078 = vmatmul.f32.gmra.mxu0 %v2665_v39 }
  0xd1   : > { %v372_v62 = vpop.f32.mrf.mxu1  ;;  %v462_v1 = vpop.f32.mrf.mxu3 }
  0xd2   : > { %v417_v63 = vpop.f32.mrf.mxu2  ;;  %v373_v0 = vadd.f32 %v372_v62, %v319_v59 }
  0xd4   : > { %v418_v2 = vadd.f32 %v417_v63, %v373_v0  ;;  %1115 = vmatmul.f32.gmra.mxu1 %v2665_v39 }
  0xd5   : > { %v495_v6 = vpop.f32.mrf.mxu0 }
  0xd6   : > { %v463_v7 = vadd.f32 %v462_v1, %v418_v2  ;;  %1381 = vmatmul.f32.vlgmr.msrb.gmra.mxu3 %v2616_v3  ;;  %v496_v8 = vadd.f32 %v495_v6, %v445_v47 }
  0xd7   : > { %1344 = vmatmul.f32.vlgmr.msrb.gmra.mxu2 %v2616_v3 }
  0xd8   : > { %1251 = vmatmul.f32.vlgmr.msrb.gmra.mxu0 %v2624_v4 }
  0xd9   : > { %v532_v10 = vpop.f32.mrf.mxu1  ;;  %v638_v20 = vpop.f32.mrf.mxu3 }
  0xda   : > { %v573_v12 = vpop.f32.mrf.mxu2  ;;  %v2712_v13 = vadd.f32 %v532_v10, %v496_v8 }
  0xdb   : > { %v2714_v30 = vadd.f32 %v638_v20, %v573_v12 }
  0xdc   : > { %v2717_v32 = vmul.f32 0.70710677, %v2712_v13  ;;  %1293 = vmatmul.f32.vlgmr.msrb.gmra.mxu1 %v2628_v17 }
  0xdd   : > { %v499_v14 = vpop.f32.mrf.mxu0 }
  0xde   : > { %v1413_v15 = vmul.f32 %v2717_v32, %v2717_v32  ;;  %1385 = vmatmul.f32.gmra.mxu3 %v2630_v18  ;;  %v500_v3 = vadd.f32 %v499_v14, %v451_v54 }
  0xdf   : > { %1348 = vmatmul.f32.gmra.mxu2 %v2630_v18 }
  0xe0   : > { %1256 = vmatmul.f32.gmra.mxu0 %v2639_v23  ;;  %v2725_v5 = vmin.f32 %v1413_v15, 16.0 }
  0xe1   : > { %v536_v16 = vpop.f32.mrf.mxu1  ;;  %v642_v22 = vpop.f32.mrf.mxu3 }
  0xe2   : > { %v581_v4 = vpop.f32.mrf.mxu2  ;;  %v2727_v9 = vadd.f32 %v536_v16, %v500_v3  ;;  %v1426_v18 = vmul.f32 3.8918573e-05, %v2725_v5  ;;  %v1415_v57 = vmul.f32 2.1237322e-06, %v2725_v5 }
  0xe3   : > { %v2729_v24 = vadd.f32 %v642_v22, %v581_v4 }
  0xe4   : > { %1299 = vmatmul.f32.gmra.mxu1 %v2643_v27  ;;  %v2733_v25 = vmul.f32 0.70710677, %v2727_v9  ;;  %v1427_v36 = vadd.f32 0.001143296, %v1426_v18  ;;  %v1416_v1 = vadd.f32 0.00028619796, %v1415_v57 }
  0xe5   : > { %v503_v17 = vpop.f32.mrf.mxu0 }
  0xe6   : > { %1389 = vmatmul.f32.gmra.mxu3 %v2645_v28  ;;  %v1493_v23 = vmul.f32 %v2733_v25, %v2733_v25  ;;  %v504_v31 = vadd.f32 %v503_v17, %v457_v61  ;;  %v1428_v40 = vmul.f32 %v1427_v36, %v2725_v5  ;;  %v1417_v15 = vmul.f32 %v1416_v1, %v2725_v5 }
  0xe7   : > { %1352 = vmatmul.f32.gmra.mxu2 %v2645_v28 }
  0xe8   : > { %1261 = vmatmul.f32.gmra.mxu0 %v2653_v34  ;;  %v2743_v11 = vmin.f32 %v1493_v23, 16.0  ;;  %v1429_v45 = vadd.f32 0.014752088, %v1428_v40  ;;  %v1418_v36 = vadd.f32 0.0036580483, %v1417_v15 }
  0xe9   : > { %v540_v33 = vpop.f32.mrf.mxu1  ;;  %v646_v27 = vpop.f32.mrf.mxu3 }
  0xea   : > { %v589_v35 = vpop.f32.mrf.mxu2  ;;  %v2741_v19 = vadd.f32 %v540_v33, %v504_v31  ;;  %v1506_v34 = vmul.f32 3.8918573e-05, %v2743_v11  ;;  %v1495_v8 = vmul.f32 2.1237322e-06, %v2743_v11 }
  0xeb   : > { %v2745_v21 = vadd.f32 %v646_v27, %v589_v35 }
  0xec   : > { %1305 = vmatmul.f32.gmra.mxu1 %v2663_v38  ;;  %v2749_v28 = vmul.f32 0.70710677, %v2741_v19  ;;  %v1507_v48 = vadd.f32 0.001143296, %v1506_v34  ;;  %v1496_v17 = vadd.f32 0.00028619796, %v1495_v8 }
  0xed   : > { %v507_v37 = vpop.f32.mrf.mxu0 }
  0xee   : > { %1393 = vmatmul.f32.gmra.mxu3 %v2665_v39  ;;  %v1573_v41 = vmul.f32 %v2749_v28, %v2749_v28  ;;  %v508_v42 = vadd.f32 %v507_v37, %v463_v7  ;;  %v1508_v52 = vmul.f32 %v1507_v48, %v2743_v11  ;;  %v1497_v34 = vmul.f32 %v1496_v17, %v2743_v11 }
  0xef   : > { %1356 = vmatmul.f32.gmra.mxu2 %v2665_v39 }
  0xf0   : > { %1266 = vmatmul.f32.gmra.mxu0 %v2677_v26  ;;  %v2758_v43 = vmin.f32 %v1573_v41, 16.0  ;;  %v1430_v26 = vmul.f32 %v1429_v45, %v2725_v5  ;;  %v1509_v61 = vadd.f32 0.014752088, %v1508_v52 }
  0xf1   : > { %v544_v38 = vpop.f32.mrf.mxu1  ;;  %v650_v47 = vpop.f32.mrf.mxu3 }
  0xf2   : > { %v597_v44 = vpop.f32.mrf.mxu2  ;;  %v2760_v46 = vadd.f32 %v544_v38, %v508_v42  ;;  %v1586_v49 = vmul.f32 3.8918573e-05, %v2758_v43  ;;  %v1431_v58 = vadd.f32 0.112945676, %v1430_v26  ;;  %v1510_v6 = vmul.f32 %v1509_v61, %v2743_v11 }
  0xf3   : > { %v2767_v51 = vadd.f32 %v650_v47, %v597_v44  ;;  %v1419_v47 = vmul.f32 %v1418_v36, %v2725_v5 }
  0xf4   : > { %v2764_v39 = vmul.f32 0.70710677, %v2760_v46  ;;  %1311 = vmatmul.f32.gmra.mxu1 %v2685_v29  ;;  %v1587_v53 = vadd.f32 0.001143296, %v1586_v49  ;;  %v1432_v2 = vmul.f32 %v1431_v58, %v2725_v5  ;;  %v1511_v4 = vadd.f32 0.112945676, %v1510_v6 }
  0xf5   : > { %v680_v50 = vpop.f32.mrf.mxu0 }
  0xf6   : > { %v1653_v54 = vmul.f32 %v2764_v39, %v2764_v39  ;;  %v1588_v29 = vmul.f32 %v1587_v53, %v2758_v43  ;;  %v681_v0 = vadd.f32 %v680_v50, %v2714_v30  ;;  %v1433_v3 = vadd.f32 0.4994258, %v1432_v2 }
  0xf7   : > { %v1575_v30 = vmul.f32 2.1237322e-06, %v2758_v43  ;;  %v1512_v40 = vmul.f32 %v1511_v4, %v2743_v11 }
  0xf8   : > { %v2774_v59 = vmin.f32 %v1653_v54, 16.0  ;;  %v1589_v10 = vadd.f32 0.014752088, %v1588_v29  ;;  %v1434_v27 = vmul.f32 %v1433_v3, %v2725_v5  ;;  %v1498_v54 = vadd.f32 0.0036580483, %v1497_v34 }
  0xf9   : > { %v722_v55 = vpop.f32.mrf.mxu1  ;;  %v810_v60 = vpop.f32.mrf.mxu3  ;;  %v1576_v41 = vadd.f32 0.00028619796, %v1575_v30  ;;  %v1513_v52 = vadd.f32 0.4994258, %v1512_v40 }
  0xfa   : > { %v773_v56 = vpop.f32.mrf.mxu2  ;;  %v1666_v63 = vmul.f32 3.8918573e-05, %v2774_v59  ;;  %v723_v7 = vadd.f32 %v722_v55, %v681_v0  ;;  %v1590_v18 = vmul.f32 %v1589_v10, %v2758_v43  ;;  %v2796_v48 = vadd.f32 1.0, %v1434_v27 }
  0xfb   : > { %v1577_v55 = vmul.f32 %v1576_v41, %v2758_v43  ;;  %v1499_v1 = vmul.f32 %v1498_v54, %v2743_v11  ;;  %v1655_v4 = vmul.f32 2.1237322e-06, %v2774_v59 }
  0xfc   : > { %v1667_v12 = vadd.f32 0.001143296, %v1666_v63  ;;  %v774_v22 = vadd.f32 %v773_v56, %v723_v7  ;;  %v1591_v42 = vadd.f32 0.112945676, %v1590_v18  ;;  %2007 = vrcp.f32 %v2796_v48 }
  0xfd   : > { %v685_v62 = vpop.f32.mrf.mxu0  ;;  %v1514_v63 = vmul.f32 %v1513_v52, %v2743_v11  ;;  %v1578_v2 = vadd.f32 0.0036580483, %v1577_v55  ;;  %vm1441_vm1 = vweird.f32 %v2796_v48 }
  0xfe   : > { %v686_v23 = vadd.f32 %v685_v62, %v2729_v24  ;;  %v1668_v33 = vmul.f32 %v1667_v12, %v2774_v59  ;;  %v2787_v35 = vadd.f32 %v810_v60, %v774_v22  ;;  %v1592_v56 = vmul.f32 %v1591_v42, %v2758_v43 }
  0xff   : > { %v1420_v62 = vadd.f32 0.05243302, %v1419_v47  ;;  %v1579_v36 = vmul.f32 %v1578_v2, %v2758_v43 }
 0x100   : > { %v2793_v38 = vmul.f32 0.70710677, %v2787_v35  ;;  %v1669_v44 = vadd.f32 0.014752088, %v1668_v33  ;;  %v1593_v6 = vadd.f32 0.4994258, %v1592_v56 }
 0x101   : > { %v728_v20 = vpop.f32.mrf.mxu1  ;;  %v814_v16 = vpop.f32.mrf.mxu3  ;;  %v1421_v15 = vmul.f32 %v1420_v62, %v2725_v5  ;;  %v1500_v33 = vadd.f32 0.05243302, %v1499_v1 }
 0x102   : > { %v777_v14 = vpop.f32.mrf.mxu2  ;;  %v729_v37 = vadd.f32 %v728_v20, %v686_v23  ;;  %v1453_v49 = vmul.f32 %v2793_v38, %v2793_v38  ;;  %v1670_v60 = vmul.f32 %v1669_v44, %v2774_v59  ;;  %v2823_v22 = vpop.eup %2007  ;;  %v1594_v17 = vmul.f32 %v1593_v6, %v2758_v43 }
 0x103   : > { %v1437_v34 = vmul.f32 %v2823_v22, %v2796_v48  ;;  %vm1442_vm2 = vweird.f32 %v2823_v22 }
 0x104   : > { %v778_v50 = vadd.f32 %v777_v14, %v729_v37  ;;  %v2803_v57 = vmin.f32 %v1453_v49, 16.0  ;;  %v1671_v7 = vadd.f32 0.112945676, %v1670_v60  ;;  %v1422_v37 = vadd.f32 0.18741608, %v1421_v15  ;;  %vm2910_vm3 = vmor %vm1441_vm1, %vm1442_vm2 }
 0x105   : > { %v690_v31 = vpop.f32.mrf.mxu0  ;;  %v2842_v44 = vadd.f32 1.0, %v1594_v17  ;;  %v1501_v49 = vmul.f32 %v1500_v33, %v2743_v11  ;;  %v1447_v17 = vand.u32 2147483648, %v2796_v48 }
 0x106   : > { %v691_v53 = vadd.f32 %v690_v31, %v2745_v21  ;;  %v2806_v61 = vadd.f32 %v814_v16, %v778_v50  ;;  %v1466_v21 = vmul.f32 3.8918573e-05, %v2803_v57  ;;  %v2820_v16 = vadd.f32 1.0, %v1514_v63 }
 0x107   : > { %v1672_v27 = vmul.f32 %v1671_v7, %v2774_v59  ;;  %v1580_v50 = vadd.f32 0.05243302, %v1579_v36  ;;  %v1502_v2 = vadd.f32 0.18741608, %v1501_v49  ;;  %vm1601_vm10 = vweird.f32 %v2842_v44 }
 0x108   : > { %v2812_v0 = vmul.f32 0.70710677, %v2806_v61  ;;  %v1467_v8 = vadd.f32 0.001143296, %v1466_v21  ;;  %2009 = vrcp.f32 %v2820_v16  ;;  %vm1521_vm5 = vweird.f32 %v2820_v16 }
 0x109   : > { %v734_v24 = vpop.f32.mrf.mxu1  ;;  %v818_v26 = vpop.f32.mrf.mxu3  ;;  %2011 = vrcp.f32 %v2842_v44  ;;  %v1581_v6 = vmul.f32 %v1580_v50, %v2758_v43 }
 0x10a   : > { %v781_v45 = vpop.f32.mrf.mxu2  ;;  %v735_v29 = vadd.f32 %v734_v24, %v691_v53  ;;  %v1533_v10 = vmul.f32 %v2812_v0, %v2812_v0  ;;  %v1468_v30 = vmul.f32 %v1467_v8, %v2803_v57  ;;  %v1656_v24 = vadd.f32 0.00028619796, %v1655_v4 }
 0x10c   : > { %v782_v12 = vadd.f32 %v781_v45, %v735_v29  ;;  %v2827_v18 = vmin.f32 %v1533_v10, 16.0  ;;  %v1469_v41 = vadd.f32 0.014752088, %v1468_v30  ;;  %v1438_v29 = vsub.f32 1.0, %v1437_v34 }
 0x10d   : > { %v695_v58 = vpop.f32.mrf.mxu0  ;;  %v1657_v63 = vmul.f32 %v1656_v24, %v2774_v59  ;;  %v2874_v30 = vmul.f32 0.5, %v2727_v9  ;;  %v1445_v9 = vand.u32 2147483647, %v2796_v48 }
 0x10e   : > { %v2829_v23 = vadd.f32 %v818_v26, %v782_v12  ;;  %v1546_v40 = vmul.f32 3.8918573e-05, %v2827_v18  ;;  %v696_v47 = vadd.f32 %v695_v58, %v2767_v51  ;;  %v1673_v26 = vadd.f32 0.4994258, %v1672_v27  ;;  %v2863_v1 = vpop.eup %2009 }
 0x10f   : > { %v1470_v62 = vmul.f32 %v1469_v41, %v2803_v57  ;;  %v1423_v58 = vmul.f32 %v1422_v37, %v2725_v5  ;;  %v1439_v5 = vmul.f32 %v2823_v22, %v1438_v29  ;;  %v1517_v33 = vmul.f32 %v2863_v1, %v2820_v16  ;;  %v2885_v41 = vpop.eup %2011 }
 0x110   : > { %v2840_v42 = vmul.f32 0.70710677, %v2829_v23  ;;  %v1547_v45 = vadd.f32 0.001143296, %v1546_v40  ;;  %v1674_v7 = vmul.f32 %v1673_v26, %v2774_v59  ;;  %v1658_v36 = vadd.f32 0.0036580483, %v1657_v63 }
 0x111   : > { %v740_v20 = vpop.f32.mrf.mxu1  ;;  %v2818_v3 = vpop.f32.mrf.mxu3  ;;  %v1471_v15 = vadd.f32 0.112945676, %v1470_v62  ;;  %v1424_v27 = vadd.f32 1.1283791, %v1423_v58  ;;  %v1503_v37 = vmul.f32 %v1502_v2, %v2743_v11  ;;  %v1440_v11 = vadd.f32 %v2823_v22, %v1439_v5 }
 0x112   : > { %v785_v14 = vpop.f32.mrf.mxu2  ;;  %v1613_v52 = vmul.f32 %v2840_v42, %v2840_v42  ;;  %v1548_v55 = vmul.f32 %v1547_v45, %v2827_v18  ;;  %v741_v56 = vadd.f32 %v740_v20, %v696_v47  ;;  %v2869_v20 = vmul.f32 0.5, %v2712_v13 }
 0x113   : > { %v2879_v40 = vadd.f32 1.0, %v1674_v7  ;;  %v1472_v49 = vmul.f32 %v1471_v15, %v2803_v57  ;;  %v1448_v26 = vor.u32 1.1754944e-38, %v1447_v17  ;;  %v1597_v58 = vmul.f32 %v2885_v41, %v2842_v44 }
 0x114   : > { %v2856_v51 = vmin.f32 %v1613_v52, 16.0  ;;  %v1549_v10 = vadd.f32 0.014752088, %v1548_v55  ;;  %v786_v12 = vadd.f32 %v785_v14, %v741_v56  ;;  %v1582_v14 = vadd.f32 0.18741608, %v1581_v6 }
 0x115   : > { %v2831_v31 = vpop.f32.mrf.mxu0  ;;  %v1518_v52 = vsub.f32 1.0, %v1517_v33  ;;  %v1659_v55 = vmul.f32 %v1658_v36, %v2774_v59  ;;  %v1455_v56 = vmul.f32 2.1237322e-06, %v2803_v57  ;;  %2013 = vrcp.f32 %v2879_v40 }
 0x116   : > { %v1626_v8 = vmul.f32 3.8918573e-05, %v2856_v51  ;;  %v1550_v24 = vmul.f32 %v1549_v10, %v2827_v18  ;;  %v2891_v45 = vadd.f32 %v2818_v3, %v786_v12  ;;  %v1504_v3 = vadd.f32 1.1283791, %v1503_v37 }
 0x117   : > { %v1583_v62 = vmul.f32 %v1582_v14, %v2758_v43  ;;  %v1425_v63 = vmul.f32 %v1424_v27, %v2717_v32  ;;  %v1525_v6 = vand.u32 2147483647, %v2820_v16  ;;  %v1444_v43 = vsel %vm2910_vm3, %v2823_v22, %v1440_v11 }
 0x118   : > { %v1627_v4 = vadd.f32 0.001143296, %v1626_v8  ;;  %v1551_v7 = vadd.f32 0.112945676, %v1550_v24  ;;  %v2916_v8 = vmul.f32 0.70710677, %v2891_v45  ;;  %v1519_v48 = vmul.f32 %v2863_v1, %v1518_v52 }
 0x119   : > { %v2848_v53 = vpop.f32.mrf.mxu1  ;;  %v2853_v60 = vpop.f32.mrf.mxu3  ;;  %v1527_v10 = vand.u32 2147483648, %v2820_v16  ;;  %v1473_v12 = vadd.f32 0.4994258, %v1472_v49  ;;  %v1660_v5 = vadd.f32 0.05243302, %v1659_v55  ;;  %vm1446_vm4 = vcmp.eq.f32.partialorder %v1445_v9, 8.507059e+37 }
 0x11a   : > { %v2850_v54 = vpop.f32.mrf.mxu2  ;;  %v1628_v50 = vmul.f32 %v1627_v4, %v2856_v51  ;;  %v1456_v15 = vadd.f32 0.00028619796, %v1455_v56  ;;  %v1693_v4 = vmul.f32 %v2916_v8, %v2916_v8  ;;  %v1505_v17 = vmul.f32 %v1504_v3, %v2733_v25 }
 0x11b   : > { %v1584_v33 = vadd.f32 1.1283791, %v1583_v62  ;;  %v1598_v36 = vsub.f32 1.0, %v1597_v58  ;;  %v1449_v22 = vsel %vm1446_vm4, %v1448_v26, %v1444_v43  ;;  %v1552_v14 = vmul.f32 %v1551_v7, %v2827_v18  ;;  %v2936_v49 = vpop.eup %2013 }
 0x11c   : > { %v1629_v32 = vadd.f32 0.014752088, %v1628_v50  ;;  %v2932_v24 = vmin.f32 %v1693_v4, 16.0  ;;  %vm2938_vm6 = vcmp.eq.f32.partialorder %v1525_v6, 8.507059e+37  ;;  %v1528_v25 = vor.u32 1.1754944e-38, %v1527_v10 }
 0x11d   : > { %v2861_v21 = vpop.f32.mrf.mxu0  ;;  %v1474_v50 = vmul.f32 %v1473_v12, %v2803_v57  ;;  %v1520_v26 = vadd.f32 %v2863_v1, %v1519_v48  ;;  %vm1522_vm7 = vweird.f32 %v2863_v1  ;;  %v1661_v55 = vmul.f32 %v1660_v5, %v2774_v59 }
 0x11e   : > { %v1630_v52 = vmul.f32 %v1629_v32, %v2856_v51  ;;  %v1457_v56 = vmul.f32 %v1456_v15, %v2803_v57  ;;  %v1450_v62 = vmul.f32 %v1449_v22, %v1425_v63  ;;  %v2951_v58 = vmul.f32 %v1584_v33, %v2749_v28  ;;  %vm2961_vm8 = vmor %vm1521_vm5, %vm1522_vm7 }
 0x11f   : > { %v1599_v2 = vmul.f32 %v2885_v41, %v1598_v36  ;;  %v1535_v6 = vmul.f32 2.1237322e-06, %v2827_v18  ;;  %v1605_v7 = vand.u32 2147483647, %v2842_v44  ;;  %v1677_v43 = vmul.f32 %v2936_v49, %v2879_v40 }
 0x120   : > { %v1553_v10 = vadd.f32 0.4994258, %v1552_v14  ;;  %v1706_v12 = vmul.f32 3.8918573e-05, %v2932_v24  ;;  %v1607_v28 = vand.u32 2147483648, %v2842_v44  ;;  %v2966_v63 = vadd.f32 1.0, %v1474_v50 }
 0x121   : > { %v2881_v13 = vpop.f32.mrf.mxu1  ;;  %v2893_v47 = vpop.f32.mrf.mxu3  ;;  %v1631_v48 = vadd.f32 0.112945676, %v1630_v52  ;;  %v933_v5 = vadd.f32 %v2848_v53, %v2831_v31  ;;  %v1524_v15 = vsel %vm2961_vm8, %v2863_v1, %v1520_v26  ;;  %v1662_v4 = vadd.f32 0.18741608, %v1661_v55 }
 0x122   : > { %v2883_v34 = vpop.f32.mrf.mxu2  ;;  %v1458_v33 = vadd.f32 0.0036580483, %v1457_v56  ;;  %v1707_v36 = vadd.f32 0.001143296, %v1706_v12  ;;  %v1600_v16 = vadd.f32 %v2885_v41, %v1599_v2  ;;  %vm1602_vm9 = vweird.f32 %v2885_v41 }
 0x123   : > { %v1536_v22 = vadd.f32 0.00028619796, %v1535_v6  ;;  %v1903_v52 = vclamps-f32 %v1450_v62, 1.0  ;;  %v1678_v31 = vsub.f32 1.0, %v1677_v43  ;;  %v1554_v53 = vmul.f32 %v1553_v10, %v2827_v18  ;;  %vm2989_vm11 = vmor %vm1601_vm10, %vm1602_vm9 }
 0x124   : > { %v1708_v1 = vmul.f32 %v1707_v36, %v2932_v24  ;;  %v1529_v55 = vsel %vm2938_vm6, %v1528_v25, %v1524_v15  ;;  %2015 = vrcp.f32 %v2966_v63  ;;  %v1632_v56 = vmul.f32 %v1631_v48, %v2856_v51 }
 0x125   : > { %v2901_v29 = vpop.f32.mrf.mxu0  ;;  %v975_v2 = vadd.f32 %v2850_v54, %v933_v5  ;;  %vm2993_vm12 = vcmp.eq.f32.partialorder %v1605_v7, 8.507059e+37  ;;  %v1608_v6 = vor.u32 1.1754944e-38, %v1607_v28  ;;  %v1663_v43 = vmul.f32 %v1662_v4, %v2774_v59 }
 0x126   : > { %v1459_v9 = vmul.f32 %v1458_v33, %v2803_v57  ;;  %v1604_v10 = vsel %vm2989_vm11, %v2885_v41, %v1600_v16  ;;  %v1537_v54 = vmul.f32 %v1536_v22, %v2827_v18  ;;  %v1615_v12 = vmul.f32 2.1237322e-06, %v2856_v51 }
 0x127   : > { %v1709_v32 = vadd.f32 0.014752088, %v1708_v1  ;;  %v1530_v48 = vmul.f32 %v1529_v55, %v1505_v17  ;;  %v1679_v7 = vmul.f32 %v2936_v49, %v1678_v31  ;;  %v3005_v5 = vadd.f32 1.0, %v1554_v53 }
 0x128   : > { %v937_v59 = vadd.f32 %v2881_v13, %v2861_v21  ;;  %v1633_v28 = vadd.f32 0.4994258, %v1632_v56  ;;  %v1017_v4 = vadd.f32 %v2853_v60, %v975_v2  ;;  %v1733_v33 = vadd.f32 1.0, %v1903_v52 }
 0x129   : > { %v2926_v27 = vpop.f32.mrf.mxu1  ;;  %v2934_v11 = vpop.f32.mrf.mxu3  ;;  %v1710_v15 = vmul.f32 %v1709_v32, %v2932_v24  ;;  %v1609_v41 = vsel %vm2993_vm12, %v1608_v6, %v1604_v10  ;;  %vm1682_vm13 = vweird.f32 %v2936_v49  ;;  %v1687_v17 = vand.u32 2147483648, %v2879_v40 }
 0x12a   : > { %v2928_v37 = vpop.f32.mrf.mxu2  ;;  %v1460_v36 = vadd.f32 0.05243302, %v1459_v9  ;;  %v3015_v16 = vpop.eup %2015  ;;  %v1538_v22 = vadd.f32 0.0036580483, %v1537_v54  ;;  %v1616_v31 = vadd.f32 0.00028619796, %v1615_v12  ;;  %v1680_v60 = vadd.f32 %v2936_v49, %v1679_v7 }
 0x12b   : > { %v1711_v53 = vadd.f32 0.112945676, %v1710_v15  ;;  %2017 = vrcp.f32 %v3005_v5  ;;  %v980_v52 = vadd.f32 %v2883_v34, %v937_v59  ;;  %v1905_v56 = vclamps-f32 %v1530_v48, 1.0 }
 0x12c   : > { %v1634_v2 = vmul.f32 %v1633_v28, %v2856_v51  ;;  %v1741_v6 = vmul.f32 %v1733_v33, %v2869_v20  ;;  %vm1681_vm14 = vweird.f32 %v2879_v40  ;;  %v1685_v9 = vand.u32 2147483647, %v2879_v40 }
 0x12d   : > { %v2948_v3 = vpop.f32.mrf.mxu0  ;;  %v1712_v62 = vmul.f32 %v1711_v53, %v2932_v24  ;;  %v1477_v34 = vmul.f32 %v3015_v16, %v2966_v63  ;;  %v1610_v54 = vmul.f32 %v1609_v41, %v2951_v58  ;;  %vm3035_vm15 = vmor %vm1681_vm14, %vm1682_vm13  ;;  %v1539_v20 = vmul.f32 %v1538_v22, %v2827_v18 }
 0x12e   : > { %v1617_v32 = vmul.f32 %v1616_v31, %v2856_v51  ;;  %v1684_v48 = vsel %vm3035_vm15, %v2936_v49, %v1680_v60  ;;  %v1023_v7 = vadd.f32 %v2893_v47, %v980_v52  ;;  %v941_v58 = vadd.f32 %v2926_v27, %v2901_v29 }
 0x12f   : > { %v1735_v59 = vadd.f32 1.0, %v1905_v56  ;;  %v1688_v28 = vor.u32 1.1754944e-38, %v1687_v17  ;;  %v3047_v15 = vadd.f32 1.0, %v1634_v2  ;;  %v1713_v33 = vadd.f32 0.4994258, %v1712_v62 }
 0x130   : > { %v1664_v49 = vadd.f32 1.1283791, %v1663_v43  ;;  %vm1686_vm0 = vcmp.eq.f32.partialorder %v1685_v9, 8.507059e+37  ;;  %v1478_v47 = vsub.f32 1.0, %v1477_v34  ;;  %v1540_v27 = vadd.f32 0.05243302, %v1539_v20 }
 0x131   : > { %v2975_v14 = vpop.f32.mrf.mxu1  ;;  %v2982_v26 = vpop.f32.mrf.mxu3  ;;  %v1689_v22 = vsel %vm1686_vm0, %v1688_v28, %v1684_v48  ;;  %v1618_v17 = vadd.f32 0.0036580483, %v1617_v32  ;;  %v1743_v60 = vmul.f32 %v1735_v59, %v2874_v30  ;;  %v1907_v56 = vclamps-f32 %v1610_v54, 1.0 }
 0x132   : > { %v2977_v50 = vpop.f32.mrf.mxu2  ;;  %v3055_v41 = vpop.eup %2017  ;;  %2019 = vrcp.f32 %v3047_v15  ;;  %v1714_v62 = vmul.f32 %v1713_v33, %v2932_v24  ;;  %v1401_v30 = vmul.f32 0.5, %v2741_v19  ;;  %v945_v12 = vadd.f32 %v2975_v14, %v2948_v3 }
 0x133   : > { %v1557_v43 = vmul.f32 %v3055_v41, %v3005_v5  ;;  %v1619_v34 = vmul.f32 %v1618_v17, %v2856_v51  ;;  %v1737_v20 = vadd.f32 1.0, %v1907_v56  ;;  %vm1482_vm1 = vweird.f32 %v3015_v16 }
 0x134   : > { %v3078_v48 = vadd.f32 1.0, %v1714_v62  ;;  %vm1481_vm2 = vweird.f32 %v2966_v63  ;;  %v1487_v3 = vand.u32 2147483648, %v2966_v63  ;;  %vm1562_vm5 = vweird.f32 %v3055_v41 }
 0x135   : > { %v1067_v25 = vpop.f32.mrf.mxu0  ;;  %v1558_v32 = vsub.f32 1.0, %v1557_v43  ;;  %vm3094_vm3 = vmor %vm1481_vm2, %vm1482_vm1  ;;  %vm1561_vm6 = vweird.f32 %v3005_v5  ;;  %vm1641_vm10 = vweird.f32 %v3047_v15 }
 0x136   : > { %v1068_v21 = vadd.f32 %v1067_v25, %v1017_v4  ;;  %v1461_v25 = vmul.f32 %v1460_v36, %v2803_v57  ;;  %v1695_v4 = vmul.f32 2.1237322e-06, %v2932_v24  ;;  %2021 = vrcp.f32 %v3078_v48  ;;  %vm1563_vm7 = vmor %vm1561_vm6, %vm1562_vm5 }
 0x137   : > { %vm1721_vm14 = vweird.f32 %v3078_v48 }
 0x138   : > { %v1462_v29 = vadd.f32 0.18741608, %v1461_v25  ;;  %v1696_v2 = vadd.f32 0.00028619796, %v1695_v4  ;;  %v1541_v25 = vmul.f32 %v1540_v27, %v2827_v18  ;;  %v990_v4 = vadd.f32 %v2977_v50, %v945_v12 }
 0x139   : > { %v1104_v13 = vpop.f32.mrf.mxu1  ;;  %v3022_v55 = vpop.f32.mrf.mxu3 }
 0x13a   : > { %v3017_v1 = vpop.f32.mrf.mxu2  ;;  %v1105_v44 = vadd.f32 %v1104_v13, %v1068_v21  ;;  %v985_v21 = vadd.f32 %v2928_v37, %v941_v58  ;;  %v1542_v14 = vadd.f32 0.18741608, %v1541_v25 }
 0x13c   : > { %v1749_v40 = vmul.f32 %v1741_v6, %v1105_v44  ;;  %v1665_v44 = vmul.f32 %v1664_v49, %v2764_v39  ;;  %v1479_v6 = vmul.f32 %v3015_v16, %v1478_v47  ;;  %v1029_v54 = vadd.f32 %v2934_v11, %v985_v21  ;;  %v3083_v11 = vpop.eup %2019 }
 0x13d   : > { %v1071_v10 = vpop.f32.mrf.mxu0  ;;  %v1463_v39 = vmul.f32 %v1462_v29, %v2803_v57  ;;  %v1620_v57 = vadd.f32 0.05243302, %v1619_v34  ;;  %v1745_v49 = vmul.f32 %v1737_v20, %v1401_v30  ;;  %v1637_v17 = vmul.f32 %v3083_v11, %v3047_v15 }
 0x13e   : > { %1757 = vst [vmem:[%s3052_s1] sm:$0xff] %v1749_v40  ;;  %v1072_v36 = vadd.f32 %v1071_v10, %v1023_v7  ;;  %v1690_v10 = vmul.f32 %v1689_v22, %v1665_v44  ;;  %v1697_v40 = vmul.f32 %v1696_v2, %v2932_v24  ;;  %v1480_v19 = vadd.f32 %v3015_v16, %v1479_v6 }
 0x13f   : > { %v1485_v7 = vand.u32 2147483647, %v2966_v63  ;;  %v1559_v63 = vmul.f32 %v3055_v41, %v1558_v32  ;;  %v1464_v27 = vadd.f32 1.1283791, %v1463_v39  ;;  %v1543_v56 = vmul.f32 %v1542_v14, %v2827_v18  ;;  %v3115_v18 = vpop.eup %2021 }
 0x140   : > { %v1698_v29 = vadd.f32 0.0036580483, %v1697_v40  ;;  %v1484_v50 = vsel %vm3094_vm3, %v3015_v16, %v1480_v19  ;;  %v1621_v43 = vmul.f32 %v1620_v57, %v2856_v51  ;;  %v1035_v2 = vadd.f32 %v2982_v26, %v990_v4 }
 0x141   : > { %v1108_v31 = vpop.f32.mrf.mxu1  ;;  %v3061_v52 = vpop.f32.mrf.mxu3  ;;  %vm1486_vm4 = vcmp.eq.f32.partialorder %v1485_v7, 8.507059e+37  ;;  %v1560_v16 = vadd.f32 %v3055_v41, %v1559_v63  ;;  %v1565_v26 = vand.u32 2147483647, %v3005_v5  ;;  %v1211_v57 = vadd.f32 %v3022_v55, %v3017_v1 }
 0x142   : > { %v3057_v53 = vpop.f32.mrf.mxu2  ;;  %v1109_v13 = vadd.f32 %v1108_v31, %v1072_v36  ;;  %v1909_v36 = vclamps-f32 %v1690_v10, 1.0  ;;  %v1699_v6 = vmul.f32 %v1698_v29, %v2932_v24  ;;  %v1622_v32 = vadd.f32 0.18741608, %v1621_v43 }
 0x143   : > { %v1564_v39 = vsel %vm1563_vm7, %v3055_v41, %v1560_v16  ;;  %vm1566_vm8 = vcmp.eq.f32.partialorder %v1565_v26, 8.507059e+37  ;;  %vm1642_vm9 = vweird.f32 %v3083_v11  ;;  %v1647_v29 = vand.u32 2147483648, %v3047_v15 }
 0x144   : > { %v1751_v37 = vmul.f32 %v1743_v60, %v1109_v13  ;;  %v1403_v13 = vmul.f32 0.5, %v2760_v46  ;;  %v1488_v60 = vor.u32 1.1754944e-38, %v1487_v3  ;;  %v1739_v62 = vadd.f32 1.0, %v1909_v36  ;;  %vm1643_vm11 = vmor %vm1641_vm10, %vm1642_vm9 }
 0x145   : > { %v1075_v9 = vpop.f32.mrf.mxu0  ;;  %v1567_v46 = vand.u32 2147483648, %v3005_v5  ;;  %v1700_v40 = vadd.f32 0.05243302, %v1699_v6  ;;  %v1717_v5 = vmul.f32 %v3115_v18, %v3078_v48  ;;  %v1623_v41 = vmul.f32 %v1622_v32, %v2856_v51 }
 0x146   : > { %1759 = vst [vmem:[%s3052_s1 + $0x10] sm:$0xff] %v1751_v37  ;;  %v1076_v58 = vadd.f32 %v1075_v9, %v1029_v54  ;;  %v1489_v44 = vsel %vm1486_vm4, %v1488_v60, %v1484_v50  ;;  %v1465_v37 = vmul.f32 %v1464_v27, %v2793_v38  ;;  %v1638_v9 = vsub.f32 1.0, %v1637_v17 }
 0x147   : > { %v1747_v12 = vmul.f32 %v1739_v62, %v1403_v13  ;;  %v1544_v38 = vadd.f32 1.1283791, %v1543_v56  ;;  %v1568_v19 = vor.u32 1.1754944e-38, %v1567_v46  ;;  %v1718_v36 = vsub.f32 1.0, %v1717_v5 }
 0x148   : > { %v1490_v10 = vmul.f32 %v1489_v44, %v1465_v37  ;;  %v1639_v7 = vmul.f32 %v3083_v11, %v1638_v9  ;;  %v1645_v1 = vand.u32 2147483647, %v3047_v15  ;;  %v1624_v17 = vadd.f32 1.1283791, %v1623_v41 }
 0x149   : > { %v1112_v59 = vpop.f32.mrf.mxu1  ;;  %v3090_v47 = vpop.f32.mrf.mxu3  ;;  %v1569_v14 = vsel %vm1566_vm8, %v1568_v19, %v1564_v39  ;;  %v1545_v4 = vmul.f32 %v1544_v38, %v2812_v0  ;;  %v1719_v60 = vmul.f32 %v3115_v18, %v1718_v36  ;;  %v1215_v15 = vadd.f32 %v3061_v52, %v3057_v53 }
 0x14a   : > { %v3087_v28 = vpop.f32.mrf.mxu2  ;;  %v1113_v33 = vadd.f32 %v1112_v59, %v1076_v58  ;;  %v1904_v59 = vclamps-f32 %v1490_v10, 1.0  ;;  %vm1646_vm12 = vcmp.eq.f32.partialorder %v1645_v1, 8.507059e+37  ;;  %v1625_v6 = vmul.f32 %v1624_v17, %v2840_v42 }
 0x14b   : > { %v1570_v63 = vmul.f32 %v1569_v14, %v1545_v4  ;;  %vm1722_vm13 = vweird.f32 %v3115_v18  ;;  %v1725_v52 = vand.u32 2147483647, %v3078_v48 }
 0x14c   : > { %v1753_v31 = vmul.f32 %v1745_v49, %v1113_v33  ;;  %v1701_v33 = vmul.f32 %v1700_v40, %v2932_v24  ;;  %v1640_v49 = vadd.f32 %v3083_v11, %v1639_v7  ;;  %v1734_v51 = vadd.f32 1.0, %v1904_v59  ;;  %vm1723_vm15 = vmor %vm1721_vm14, %vm1722_vm13 }
 0x14d   : > { %v1079_v21 = vpop.f32.mrf.mxu0  ;;  %v1906_v62 = vclamps-f32 %v1570_v63, 1.0  ;;  %vm1726_vm0 = vcmp.eq.f32.partialorder %v1725_v52, 8.507059e+37  ;;  %v1219_v7 = vadd.f32 %v3090_v47, %v3087_v28 }
 0x14e   : > { %1761 = vst [vmem:[%s3052_s1 + $0x20] sm:$0xff] %v1753_v31  ;;  %v1080_v30 = vadd.f32 %v1079_v21, %v1035_v2  ;;  %v1702_v31 = vadd.f32 0.18741608, %v1701_v33  ;;  %v1398_v21 = vmul.f32 0.5, %v2787_v35  ;;  %v1644_v13 = vsel %vm1643_vm11, %v3083_v11, %v1640_v49 }
 0x14f   : > { %v1648_v2 = vor.u32 1.1754944e-38, %v1647_v29  ;;  %v1720_v11 = vadd.f32 %v3115_v18, %v1719_v60  ;;  %v1736_v10 = vadd.f32 1.0, %v1906_v62  ;;  %v1402_v49 = vmul.f32 0.5, %v2829_v23 }
 0x150   : > { %v1742_v16 = vmul.f32 %v1734_v51, %v1398_v21  ;;  %v1703_v35 = vmul.f32 %v1702_v31, %v2932_v24  ;;  %v1400_v24 = vmul.f32 0.5, %v2806_v61 }
 0x151   : > { %v1116_v25 = vpop.f32.mrf.mxu1  ;;  %v3121_v20 = vpop.f32.mrf.mxu3  ;;  %v1649_v37 = vsel %vm1646_vm12, %v1648_v2, %v1644_v13  ;;  %v1724_v38 = vsel %vm1723_vm15, %v3115_v18, %v1720_v11 }
 0x152   : > { %v3119_v34 = vpop.f32.mrf.mxu2  ;;  %v1117_v54 = vadd.f32 %v1116_v25, %v1080_v30  ;;  %v1727_v30 = vand.u32 2147483648, %v3078_v48  ;;  %v1650_v53 = vmul.f32 %v1649_v37, %v1625_v6  ;;  %v1744_v19 = vmul.f32 %v1736_v10, %v1400_v24 }
 0x153   : > { %v1223_v36 = vadd.f32 %v3121_v20, %v3119_v34  ;;  %v1404_v34 = vmul.f32 0.5, %v2891_v45 }
 0x154   : > { %v1755_v58 = vmul.f32 %v1747_v12, %v1117_v54  ;;  %v1704_v12 = vadd.f32 1.1283791, %v1703_v35  ;;  %v1728_v40 = vor.u32 1.1754944e-38, %v1727_v30  ;;  %v1908_v48 = vclamps-f32 %v1650_v53, 1.0 }
 0x155   : > { %v1252_v3 = vpop.f32.mrf.mxu0 }
 0x156   : > { %1763 = vst [vmem:[%s3052_s1 + $0x30] sm:$0xff] %v1755_v58  ;;  %v1253_v22 = vadd.f32 %v1252_v3, %v1211_v57  ;;  %v1729_v58 = vsel %vm1726_vm0, %v1728_v40, %v1724_v38  ;;  %v1705_v3 = vmul.f32 %v1704_v12, %v2916_v8  ;;  %v1738_v33 = vadd.f32 1.0, %v1908_v48 }
 0x158   : > { %v1730_v18 = vmul.f32 %v1729_v58, %v1705_v3 }
 0x159   : > { %v1294_v27 = vpop.f32.mrf.mxu1  ;;  %v1382_v55 = vpop.f32.mrf.mxu3 }
 0x15a   : > { %v1345_v50 = vpop.f32.mrf.mxu2  ;;  %v1295_v0 = vadd.f32 %v1294_v27, %v1253_v22  ;;  %v1746_v22 = vmul.f32 %v1738_v33, %v1402_v49  ;;  %v1910_v63 = vclamps-f32 %v1730_v18, 1.0 }
 0x15c   : > { %v1346_v43 = vadd.f32 %v1345_v50, %v1295_v0 }
 0x15d   : > { %v1257_v56 = vpop.f32.mrf.mxu0 }
 0x15e   : > { %v1383_v44 = vadd.f32 %v1382_v55, %v1346_v43  ;;  %v1258_v46 = vadd.f32 %v1257_v56, %v1215_v15  ;;  %v1740_v55 = vadd.f32 1.0, %v1910_v63 }
 0x160   : > { %v1750_v9 = vmul.f32 %v1742_v16, %v1383_v44  ;;  %v1748_v17 = vmul.f32 %v1740_v55, %v1404_v34 }
 0x161   : > { %v1300_v26 = vpop.f32.mrf.mxu1  ;;  %v1386_v54 = vpop.f32.mrf.mxu3 }
 0x162   : > { %v1349_v25 = vpop.f32.mrf.mxu2  ;;  %1758 = vst [vmem:[%s3052_s1 + $0x8] sm:$0xff] %v1750_v9  ;;  %v1301_v42 = vadd.f32 %v1300_v26, %v1258_v46 }
 0x164   : > { %v1350_v32 = vadd.f32 %v1349_v25, %v1301_v42 }
 0x165   : > { %v1262_v39 = vpop.f32.mrf.mxu0 }
 0x166   : > { %v1387_v5 = vadd.f32 %v1386_v54, %v1350_v32  ;;  %v1263_v14 = vadd.f32 %v1262_v39, %v1219_v7 }
 0x168   : > { %v1752_v61 = vmul.f32 %v1744_v19, %v1387_v5 }
 0x169   : > { %v1306_v57 = vpop.f32.mrf.mxu1  ;;  %v1390_v41 = vpop.f32.mrf.mxu3 }
 0x16a   : > { %v1353_v59 = vpop.f32.mrf.mxu2  ;;  %1760 = vst [vmem:[%s3052_s1 + $0x18] sm:$0xff] %v1752_v61  ;;  %v1307_v4 = vadd.f32 %v1306_v57, %v1263_v14 }
 0x16c   : > { %v1354_v28 = vadd.f32 %v1353_v59, %v1307_v4 }
 0x16d   : > { %v1267_v47 = vpop.f32.mrf.mxu0 }
 0x16e   : > { %v1391_v8 = vadd.f32 %v1390_v41, %v1354_v28  ;;  %v1268_v29 = vadd.f32 %v1267_v47, %v1223_v36 }
 0x170   : > { %v1754_v27 = vmul.f32 %v1746_v22, %v1391_v8 }
 0x171   : > { %v1312_v50 = vpop.f32.mrf.mxu1  ;;  %v1394_v23 = vpop.f32.mrf.mxu3 }
 0x172   : > { %v1357_v1 = vpop.f32.mrf.mxu2  ;;  %1762 = vst [vmem:[%s3052_s1 + $0x28] sm:$0xff] %v1754_v27  ;;  %v1313_v0 = vadd.f32 %v1312_v50, %v1268_v29 }
 0x174   : > { %v1358_v20 = vadd.f32 %v1357_v1, %v1313_v0 }
 0x176   : > { %v1395_v51 = vadd.f32 %v1394_v23, %v1358_v20 }
 0x178   : > { %v1756_v31 = vmul.f32 %v1748_v17, %v1395_v51 }
 0x17a   : > { %1764 = vst [vmem:[%s3052_s1 + $0x38] sm:$0xff] %v1756_v31 }
 0x17b   : > { %2140 = shalt.err (!%p2137_p0)
}
 0x17c   : > { %s2207_s11 = smov 256   ;;  %s2208_s24 = smov 16  }
 0x17d   : > { %1928 = dma.vmem_to_hbm [thread:$0]  (%p2312_p7), %s1781_s28, 1024, %s1783_s15, %s1766_s30, %s2207_s11, %s2207_s11, %s2208_s24  }
 0x17e PF: > { %s1797_s26 = sand.u32 1, %s2179_s12   ;;  %p1942_p3 = pnand %p1894_p11, %p2278_p6 }
 0x17f   : > { %s1798_s18 = scalar_lea.sflag [#allocation4], %s1797_s26 }
 0x180   : > { %p1943_p5 = pneg %p1942_p3 }
 0x182   : > { %2174 = dma.done.wait (%p1943_p5), %s1798_s18, 1024  }
 0x183   : > { %2176 = vsyncadd (%p1943_p5), %s1798_s18, 4294966272  ;;  %s20_s17 = sadd.s32 1, %s2199_s17   ;;  %s3229_s12 = smov %s2183_s13 }
 0x184   : > { %p17_p9 = scmp.ge.s32.totalorder %s20_s17, 4   ;;  %s3230_s13 = smov %s2187_s14 }
 0x185   : > { %s3231_s14 = smov %s2321_s29  ;;  %s3232_s15 = smov %s2195_s16 }
 0x186   : > { %s3233_s16 = smov %s3235_s10  ;;  %19 = sbr.rel (!%p17_p9) target bundleno = 9 (0x9), region = 85 }
 0x18b   :  { %1804 = vsyncpa [#allocation3], 1 }
 0x18c   :  { %1806 = vsyncpa [#allocation3 + $0x1], 1 }
 0x18d   :  { %1807 = vsyncpa [#allocation6], 1 }
 0x18e   :  { %1808 = vsyncpa [#allocation4], 1 }
 0x18f   :  { %1810 = vsyncpa [#allocation4 + $0x1], 1 }

</bundles_post_ra>
